<compile_context>
chip_gen: v6e
topology: v6e:2x2x1
jax: 0.10.0
libtpu: 0.0.40
codegen_flags: <defaults>
</compile_context>

<pallas_src>
import jax
import jax.numpy as jnp
from jax import lax
from jax.experimental import pallas as pl
from jax.experimental.pallas import tpu as pltpu


def _sigmoid(x):
    # sigmoid(x) == 0.5*tanh(0.5*x) + 0.5 : one EUP pass + a VPU fma instead of
    # exp + reciprocal (two EUP passes).  Mathematically identical.
    return 0.5 * jnp.tanh(0.5 * x) + 0.5


# ---------------------------------------------------------------------------
# Kernel 1: input projection as ONE tiled GEMM over all (t, b) rows.
#   Xproj = X @ W_ih^T + (b_ih + b_hh)
# ---------------------------------------------------------------------------
def proj_kernel(x_ref, w_ref, b_ref, out_ref):
    # x_ref: (TR, E) bf16 ; w_ref: (E, G) bf16 ; b_ref: (1, G) f32
    # out_ref: (TR, G) bf16
    acc = jnp.dot(x_ref[...], w_ref[...], preferred_element_type=jnp.float32)
    out_ref[...] = (acc + b_ref[...]).astype(out_ref.dtype)


# ---------------------------------------------------------------------------
# Kernel 2: LSTM recurrence (TT timesteps per grid step) + classifier head.
# grid = (batch_tiles, Tp // TT), semantics ("parallel", "arbitrary").
# ---------------------------------------------------------------------------
def lstm_kernel(xproj_ref, whh_ref, wfc_ref, bfc_ref, out_ref, h_ref, c_ref):
    # xproj_ref: (TT, Bt, G) bf16  pre-projected gate inputs (streamed slab)
    # whh_ref:   (Hg, G)     bf16  hidden->gates weight (VMEM resident)
    # wfc_ref:   (Hg, O)     bf16  classifier weight (resident)
    # bfc_ref:   (1, O)      f32
    # out_ref:   (Bt, O)     f32   written only on the last grid step
    # h_ref/c_ref: (Bt, Hg)  f32   state carried across the serial T axis
    tb = pl.program_id(1)
    n_tb = pl.num_programs(1)
    hg = whh_ref.shape[0]          # per-gate width
    tt = xproj_ref.shape[0]        # timesteps in this slab

    @pl.when(tb == 0)
    def _():
        h_ref[...] = jnp.zeros_like(h_ref)
        c_ref[...] = jnp.zeros_like(c_ref)

    def step(i, carry):
        h, c = carry
        # Only h @ W_hh sits on the serial path; bf16 operands, f32 accumulate.
        gates = xproj_ref[i].astype(jnp.float32) + jnp.dot(
            h.astype(jnp.bfloat16), whh_ref[...],
            preferred_element_type=jnp.float32)
        i_g = _sigmoid(gates[:, 0 * hg:1 * hg])
        f_g = _sigmoid(gates[:, 1 * hg:2 * hg])
        g_g = jnp.tanh(gates[:, 2 * hg:3 * hg])
        o_g = _sigmoid(gates[:, 3 * hg:4 * hg])
        c = f_g * c + i_g * g_g
        h = o_g * jnp.tanh(c)
        return h, c

    h, c = lax.fori_loop(0, tt, step, (h_ref[...], c_ref[...]), unroll=True)
    h_ref[...] = h
    c_ref[...] = c

    @pl.when(tb == n_tb - 1)
    def _():
        logits = jnp.dot(h.astype(jnp.bfloat16), wfc_ref[...],
                         preferred_element_type=jnp.float32) + bfc_ref[...]
        out_ref[...] = _sigmoid(logits).astype(out_ref.dtype)


# ---------------------------------------------------------------------------
# Wrapper
# ---------------------------------------------------------------------------
def lstm_classifier_forward(x_ids, params, *, time_block=16):
    """x_ids: (batch, seq) int32 token ids. Returns (batch, 1) f32 probs."""
    emb, w_ih, w_hh, b_ih, b_hh, w_fc, b_fc = params
    B, T = x_ids.shape
    E = emb.shape[1]
    H = w_hh.shape[1]          # w_hh: (4H, H)
    O = w_fc.shape[0]          # w_fc: (O, H)

    LANE, SUB = 128, 8

    # Gate packing: tiny H -> all 4 gates in one contiguous block (G = 4H);
    # large H -> pad each gate to a lane multiple.
    Hg = H if 4 * H <= LANE else pl.cdiv(H, LANE) * LANE
    G = 4 * Hg

    # Batch tiling: one tile when it fits; 128-row tiles otherwise (Bp >= 256
    # then yields nb >= 2 so both v7x TensorCores are used on the batch axis).
    Bp = pl.cdiv(B, SUB) * SUB
    b_tile = Bp if Bp <= 128 else 128
    Bp = pl.cdiv(Bp, b_tile) * b_tile
    nb = Bp // b_tile

    # Timestep blocking: TT steps per serial grid iteration (amortizes the
    # ~600-cycle per-step pipeline overhead).  T is front-padded to Tp.
    TT = max(1, min(T, time_block))
    Tp = pl.cdiv(T, TT) * TT

    # --- parameter layout (XLA glue) ----------------------------------------
    def pad_gates(a, axis):
        if Hg == H:
            return a
        parts = jnp.split(a, 4, axis=axis)
        pads = [(0, 0)] * a.ndim
        pads[axis] = (0, Hg - H)
        return jnp.concatenate([jnp.pad(p, pads) for p in parts], axis=axis)

    wih_t = pad_gates(w_ih, 0).T.astype(jnp.bfloat16)                    # (E, G)
    whh_t = jnp.pad(pad_gates(w_hh, 0),
                    ((0, 0), (0, Hg - H))).T.astype(jnp.bfloat16)        # (Hg, G)
    bias = pad_gates(b_ih + b_hh, 0).reshape(1, G).astype(jnp.float32)   # (1, G)
    wfc_t = jnp.pad(w_fc, ((0, 0), (0, Hg - H))).T.astype(jnp.bfloat16)  # (Hg, O)
    bfc_p = b_fc.reshape(1, O).astype(jnp.float32)                       # (1, O)

    # --- embedding lookup, already in (T, B, E) order (no big transpose) ----
    embeds = jnp.take(emb.astype(jnp.bfloat16), x_ids.T, axis=0)         # (T, B, E)
    embeds = jnp.pad(embeds, ((0, 0), (0, Bp - B), (0, 0)))              # (T, Bp, E)
    x_rows = embeds.reshape(T * Bp, E)

    # --- Pallas kernel 1: one tiled GEMM for the input projection -----------
    R = T * Bp
    TR = min(R, 512)                       # multiple of 8 since Bp is
    Rp = pl.cdiv(R, TR) * TR
    x_rows = jnp.pad(x_rows, ((0, Rp - R), (0, 0)))

    xproj_flat = pl.pallas_call(
        proj_kernel,
        out_shape=jax.ShapeDtypeStruct((Rp, G), jnp.bfloat16),
        grid=(Rp // TR,),
        in_specs=[
            pl.BlockSpec((TR, E), lambda r: (r, 0)),
            pl.BlockSpec((E, G), lambda r: (0, 0)),
            pl.BlockSpec((1, G), lambda r: (0, 0)),
        ],
        out_specs=pl.BlockSpec((TR, G), lambda r: (r, 0)),
        compiler_params=pltpu.CompilerParams(
            dimension_semantics=("parallel",)),
    )(x_rows, wih_t, bias)

    xproj = xproj_flat[:R].reshape(T, Bp, G)
    # Front-pad T so Tp % TT == 0.  Zero xproj rows keep h == c == 0 through
    # the padded steps (gates=0 -> i=f=o=0.5, g=0), so the real sequence still
    # starts from the zero state.
    xproj = jnp.pad(xproj, ((Tp - T, 0), (0, 0), (0, 0)))

    # --- Pallas kernel 2: serial LSTM recurrence + classifier head ----------
    cost = pl.CostEstimate(
        flops=2 * Tp * Bp * Hg * G + 10 * Tp * Bp * Hg + 2 * Bp * Hg * O,
        transcendentals=5 * Tp * Bp * Hg + Bp * O,
        bytes_accessed=2 * Tp * Bp * G + 2 * (Hg * G + Hg * O)
                       + 4 * (G + O + Bp * O),
    )
    out_p = pl.pallas_call(
        lstm_kernel,
        out_shape=jax.ShapeDtypeStruct((Bp, O), jnp.float32),
        grid=(nb, Tp // TT),
        in_specs=[
            pl.BlockSpec((TT, b_tile, G), lambda b, t: (t, b, 0)),  # streamed
            pl.BlockSpec((Hg, G), lambda b, t: (0, 0)),             # resident
            pl.BlockSpec((Hg, O), lambda b, t: (0, 0)),             # resident
            pl.BlockSpec((1, O), lambda b, t: (0, 0)),              # resident
        ],
        out_specs=pl.BlockSpec((b_tile, O), lambda b, t: (b, 0)),
        scratch_shapes=[
            pltpu.VMEM((b_tile, Hg), jnp.float32),   # h
            pltpu.VMEM((b_tile, Hg), jnp.float32),   # c
        ],
        compiler_params=pltpu.CompilerParams(
            dimension_semantics=("parallel", "arbitrary")),
        cost_estimate=cost,
    )(xproj, whh_t, wfc_t, bfc_p)

    return out_p[:B]


# ---------------------------------------------------------------------------
# Pure-JAX reference (PyTorch LSTM semantics, f32, unpadded)
# ---------------------------------------------------------------------------
def reference_forward(x_ids, params):
    emb, w_ih, w_hh, b_ih, b_hh, w_fc, b_fc = params
    B, T = x_ids.shape
    H = w_hh.shape[1]
    e = jnp.take(emb, x_ids, axis=0)                     # (B, T, E)
    h = jnp.zeros((B, H), jnp.float32)
    c = jnp.zeros((B, H), jnp.float32)
    for t in range(T):
        gates = e[:, t, :] @ w_ih.T + b_ih + h @ w_hh.T + b_hh
        i, f, g, o = jnp.split(gates, 4, axis=-1)
        i = jax.nn.sigmoid(i)
        f = jax.nn.sigmoid(f)
        g = jnp.tanh(g)
        o = jax.nn.sigmoid(o)
        c = f * c + i * g
        h = o * jnp.tanh(c)
    return jax.nn.sigmoid(h @ w_fc.T + b_fc)


if __name__ == "__main__":
    max_features, embedding_dim, hidden_dim, output_size = 1000, 8, 8, 1
    batch, seq = 2, 8

    key = jax.random.PRNGKey(0)
    ks = jax.random.split(key, 8)
    bound = float(hidden_dim) ** -0.5

    # Deterministic parameters (nn.Embedding / nn.LSTM / nn.Linear shapes).
    emb = jax.random.normal(ks[0], (max_features, embedding_dim), jnp.float32)
    w_ih = jax.random.uniform(ks[1], (4 * hidden_dim, embedding_dim), jnp.float32, -bound, bound)
    w_hh = jax.random.uniform(ks[2], (4 * hidden_dim, hidden_dim), jnp.float32, -bound, bound)
    b_ih = jax.random.uniform(ks[3], (4 * hidden_dim,), jnp.float32, -bound, bound)
    b_hh = jax.random.uniform(ks[4], (4 * hidden_dim,), jnp.float32, -bound, bound)
    w_fc = jax.random.uniform(ks[5], (output_size, hidden_dim), jnp.float32, -bound, bound)
    b_fc = jax.random.uniform(ks[6], (output_size,), jnp.float32, -bound, bound)
    params = (emb, w_ih, w_hh, b_ih, b_hh, w_fc, b_fc)

    x_ids = jax.random.randint(ks[7], (batch, seq), 0, max_features, dtype=jnp.int32)

    out = lstm_classifier_forward(x_ids, params)
    out = jax.block_until_ready(out)

    ref = reference_forward(x_ids, params)
    assert out.shape == (batch, output_size)
    # bf16 matmul operands / bf16 xproj stream -> looser tolerance vs f32 ref.
    assert jnp.allclose(out, ref, atol=2e-2, rtol=2e-2), (out, ref)

    print("KERNEL_OK")
</pallas_src>

<mosaic_0001>
module attributes {stable_mosaic.version = 11 : i64} {
  func.func @proj_kernel(%arg0: i32, %arg1: memref<64x8xbf16, #tpu.memory_space<vmem>>, %arg2: memref<8x32xbf16, #tpu.memory_space<vmem>>, %arg3: memref<1x32xf32, #tpu.memory_space<vmem>>, %arg4: memref<64x32xbf16, #tpu.memory_space<vmem>>) attributes {dimension_semantics = [#tpu.dimension_semantics<parallel>], iteration_bounds = array<i64: 1>, scalar_prefetch = 0 : i64, scratch_operands = 0 : i64, tpu.core_type = #tpu.core_type<tc>, window_params = [{transform_indices = @transform_0, window_bounds = array<i64: 64, 8>}, {pipeline_mode = #tpu.pipeline_mode<synchronous>, transform_indices = @transform_1, window_bounds = array<i64: 8, 32>}, {pipeline_mode = #tpu.pipeline_mode<synchronous>, transform_indices = @transform_2, window_bounds = array<i64: 1, 32>}, {transform_indices = @transform_3, window_bounds = array<i64: 64, 32>}]} {
    %c0 = arith.constant 0 : index
    %c0_0 = arith.constant 0 : index
    %0 = vector.load %arg1[%c0, %c0_0] : memref<64x8xbf16, #tpu.memory_space<vmem>>, vector<64x8xbf16>
    %c0_1 = arith.constant 0 : index
    %c0_2 = arith.constant 0 : index
    %1 = vector.load %arg2[%c0_1, %c0_2] : memref<8x32xbf16, #tpu.memory_space<vmem>>, vector<8x32xbf16>
    %cst = arith.constant dense<0.000000e+00> : vector<64x32xf32>
    %2 = tpu.matmul %0, %1, %cst {dimension_numbers = #tpu.dot_dimension_numbers<[1], [0], [0], [1], [0, 0, 1, 1], [], []>} : vector<64x8xbf16>, vector<8x32xbf16>, vector<64x32xf32> -> vector<64x32xf32>
    %c0_3 = arith.constant 0 : index
    %c0_4 = arith.constant 0 : index
    %3 = vector.load %arg3[%c0_3, %c0_4] : memref<1x32xf32, #tpu.memory_space<vmem>>, vector<1x32xf32>
    %4 = vector.broadcast %3 : vector<1x32xf32> to vector<64x32xf32>
    %5 = arith.addf %2, %4 : vector<64x32xf32>
    %6 = arith.truncf %5 : vector<64x32xf32> to vector<64x32xbf16>
    %c0_5 = arith.constant 0 : index
    %c0_6 = arith.constant 0 : index
    %7 = vector.load %arg4[%c0_5, %c0_6] : memref<64x32xbf16, #tpu.memory_space<vmem>>, vector<64x32xbf16>
    tpu.vector_store %arg4[%c0_5, %c0_6], %6 {strides = array<i32>} : memref<64x32xbf16, #tpu.memory_space<vmem>>, vector<64x32xbf16>,
    return
  }
  func.func @transform_0(%arg0: i32) -> (i32, i32) {
    %c0_i32 = arith.constant 0 : i32
    %c0_i32_0 = arith.constant 0 : i32
    return %arg0, %c0_i32 : i32, i32
  }
  func.func @transform_1(%arg0: i32) -> (i32, i32) {
    %c0_i32 = arith.constant 0 : i32
    %c0_i32_0 = arith.constant 0 : i32
    %c0_i32_1 = arith.constant 0 : i32
    return %c0_i32, %c0_i32_0 : i32, i32
  }
  func.func @transform_2(%arg0: i32) -> (i32, i32) {
    %c0_i32 = arith.constant 0 : i32
    %c0_i32_0 = arith.constant 0 : i32
    %c0_i32_1 = arith.constant 0 : i32
    return %c0_i32, %c0_i32_0 : i32, i32
  }
  func.func @transform_3(%arg0: i32) -> (i32, i32) {
    %c0_i32 = arith.constant 0 : i32
    %c0_i32_0 = arith.constant 0 : i32
    return %arg0, %c0_i32 : i32, i32
  }
}

</mosaic_0001>

<bundles_post_ra>
// kernel: tpu_custom_call.1
= control target key start
LH: loop header
LB: loop body
LE: loop exit
PB: predicated region body
PF: predicated region fallthrough
CT: control target
= control target key end

     0   :  { %vm64_vm0 = vcmask 1043456   ;;  %vm51_vm1 = vcmask 64512   ;;  %vm165_vm2 = vcmask 257024   ;;  %s296_s1 = inlined_call_operand.vmem [shape: bf16[8,32], index: 1, kind: input, shape index: {}]   ;;  %s297_s0 = inlined_call_operand.vmem [shape: bf16[64,8], index: 0, kind: input, shape index: {}]   ;;  %s298_s2 = inlined_call_operand.vmem [shape: f32[1,32], index: 2, kind: input, shape index: {}]   ;;  %s299_s3 = inlined_call_operand.vmem [shape: bf16[64,32], index: 3, kind: output, shape index: {}]  }
   0x1   :  { %v23_v0 = vld [vmem:[%s296_s1] sm:$0xf]  ;;  %v223_v3 = vld [vmem:[%s297_s0 + $0x10] sm:$0xff]   ;;  %v224_v4 = vld [vmem:[%s297_s0 + $0x8] sm:$0xff]  }
   0x2   :  { %220 = vmatprep.subr.msk.bf16.mxu0 %vm64_vm0, %v23_v0  ;;  %221 = vmatprep.subr.msk.bf16.mxu1 %vm64_vm0, %v23_v0  ;;  %v66_v1 = vsel %vm64_vm0, %v23_v0, 0  ;;  %v222_v2 = vld [vmem:[%s297_s0] sm:$0xff]   ;;  %v225_v5 = vld [vmem:[%s297_s0 + $0x18] sm:$0xff]  }
   0x3   :  { %209 = vmatpush3.bf16.msra.mxu0 %v66_v1  ;;  %219 = vmatpush3.bf16.msra.mxu1 %v66_v1  ;;  %v178_v6 = vld [vmem:[%s298_s2] ss:$0 sm:$0xff] }
   0x4   :  { %210 = vmatprep.mubr.msk.bf16.mxu0 %vm51_vm1, %v222_v2  ;;  %214 = vmatprep.mubr.msk.bf16.mxu1 %vm51_vm1, %v223_v3 }
   0x6   :  { %211 = vmatmul.mubr.msk.bf16.vlgmr.msra.gmra.mxu0 %vm51_vm1, %v224_v4  ;;  %215 = vmatmul.mubr.msk.bf16.vlgmr.msra.gmra.mxu1 %vm51_vm1, %v225_v5 }
  0xc6   :  { %v212_v7 = vpop.f32.mrf.mxu0  ;;  %v216_v9 = vpop.f32.mrf.mxu1 }
  0xc7   :  { %v111_v8 = vadd.f32 %v212_v7, %v178_v6  ;;  %v127_v10 = vadd.f32 %v216_v9, %v178_v6 }
  0xc8   :  { %v102_v11 = vpop.f32.mrf.mxu0  ;;  %v118_v14 = vpop.f32.mrf.mxu1 }
  0xc9   :  { %v197_v12 = vpack.c.bf16 %v111_v8, %v111_v8  ;;  %v103_v13 = vadd.f32 %v178_v6, %v102_v11  ;;  %v201_v15 = vpack.c.bf16 %v127_v10, %v127_v10  ;;  %v119_v16 = vadd.f32 %v178_v6, %v118_v14 }
  0xca   :  { %v213_v17 = vpop.f32.mrf.mxu0  ;;  %v217_v20 = vpop.f32.mrf.mxu1 }
  0xcb   :  { %168 = vst.msk [vmem:[%s299_s3 + $0x8] sm:$0xf] %vm165_vm2, %v197_v12  ;;  %v195_v18 = vpack.c.bf16 %v103_v13, %v103_v13  ;;  %v114_v19 = vadd.f32 %v213_v17, %v178_v6  ;;  %172 = vst.msk [vmem:[%s299_s3 + $0x18] sm:$0xf] %vm165_vm2, %v201_v15  ;;  %v199_v21 = vpack.c.bf16 %v119_v16, %v119_v16 }
  0xcc   :  { %v130_v22 = vadd.f32 %v217_v20, %v178_v6  ;;  %v105_v23 = vpop.f32.mrf.mxu0  ;;  %v121_v26 = vpop.f32.mrf.mxu1 }
  0xcd   :  { %166 = vst.msk [vmem:[%s299_s3] sm:$0xf] %vm165_vm2, %v195_v18  ;;  %v198_v24 = vpack.c.bf16 %v114_v19, %v114_v19  ;;  %v106_v25 = vadd.f32 %v178_v6, %v105_v23  ;;  %170 = vst.msk [vmem:[%s299_s3 + $0x10] sm:$0xf] %vm165_vm2, %v199_v21  ;;  %v122_v28 = vadd.f32 %v178_v6, %v121_v26 }
  0xce   :  { %v202_v27 = vpack.c.bf16 %v130_v22, %v130_v22 }
  0xcf   :  { %169 = vst.msk [vmem:[%s299_s3 + $0xc] sm:$0xf] %vm165_vm2, %v198_v24  ;;  %v196_v29 = vpack.c.bf16 %v106_v25, %v106_v25  ;;  %v200_v30 = vpack.c.bf16 %v122_v28, %v122_v28 }
  0xd0   :  { %173 = vst.msk [vmem:[%s299_s3 + $0x1c] sm:$0xf] %vm165_vm2, %v202_v27 }
  0xd1   :  { %167 = vst.msk [vmem:[%s299_s3 + $0x4] sm:$0xf] %vm165_vm2, %v196_v29  ;;  %171 = vst.msk [vmem:[%s299_s3 + $0x14] sm:$0xf] %vm165_vm2, %v200_v30 }

</bundles_post_ra>
